<compile_context>
chip_gen: v5e
topology: v5e:2x2
jax: 0.10.0
libtpu: 0.0.40
codegen_flags: <defaults>
</compile_context>

<pallas_src>
import jax
import jax.numpy as jnp
from jax import lax
from jax.experimental import pallas as pl
from jax.experimental.pallas import tpu as pltpu


def _round_up(x, m):
    return ((x + m - 1) // m) * m


def _fhe_linear_kernel(x_ref, w_ref, b_ref, o_ref, acc_ref):
    k = pl.program_id(2)

    @pl.when(k == 0)
    def _():
        acc_ref[...] = jnp.zeros_like(acc_ref)

    # x block: (tm, tk); W block: (tn, tk) in nn.Linear (out, in) layout.
    # Contract both last dims -> (tm, tn); no HBM transpose of the weight needed.
    acc_ref[...] += lax.dot_general(
        x_ref[...], w_ref[...],
        dimension_numbers=(((1,), (1,)), ((), ())),
        preferred_element_type=jnp.float32)

    @pl.when(k == pl.num_programs(2) - 1)
    def _():
        o_ref[...] = (acc_ref[...] + b_ref[...]).astype(o_ref.dtype)


def fhe_linear(x, weight, bias, *, compute_dtype=jnp.bfloat16,
               tm=256, tn=256, tk=512):
    """x: (..., in_features); weight: (out_features, in_features); bias: (out_features,)."""
    print('FHELinear: input shape =', x.shape)  # host-side glue, not in traced path

    orig_dtype = x.dtype
    *lead, K = x.shape
    N, K_w = weight.shape
    assert K == K_w, "in_features mismatch"
    x2 = x.reshape(-1, K)
    M = x2.shape[0]

    # bf16 operands for the MXU; accumulation stays f32 inside the kernel.
    if compute_dtype is not None:
        x2 = x2.astype(compute_dtype)
        weight = weight.astype(compute_dtype)
    b2 = bias.astype(jnp.float32).reshape(1, N)

    # Clamp tiles to the (aligned) problem size; keep (8, 128) layout alignment.
    tm = min(tm, _round_up(M, 8))
    tn = min(tn, _round_up(N, 128))
    tk = min(tk, _round_up(K, 128))

    Mp, Np, Kp = _round_up(M, tm), _round_up(N, tn), _round_up(K, tk)

    # Zero-pad to tile multiples (lane-dense output, clean MXU tiles). Zero K/N
    # padding contributes nothing to the result; padded rows/cols are sliced off.
    if (Mp, Kp) != (M, K):
        x2 = jnp.pad(x2, ((0, Mp - M), (0, Kp - K)))
    if (Np, Kp) != (N, K):
        weight = jnp.pad(weight, ((0, Np - N), (0, Kp - K)))
    if Np != N:
        b2 = jnp.pad(b2, ((0, 0), (0, Np - N)))

    grid = (Mp // tm, Np // tn, Kp // tk)

    flops = 2 * M * N * K
    bytes_accessed = (x2.size * x2.dtype.itemsize
                      + weight.size * weight.dtype.itemsize
                      + b2.size * b2.dtype.itemsize
                      + M * N * jnp.dtype(orig_dtype).itemsize)

    out = pl.pallas_call(
        _fhe_linear_kernel,
        out_shape=jax.ShapeDtypeStruct((Mp, Np), orig_dtype),
        grid_spec=pltpu.PrefetchScalarGridSpec(
            num_scalar_prefetch=0,
            grid=grid,
            in_specs=[
                pl.BlockSpec((tm, tk), lambda i, j, k: (i, k)),   # x tile
                pl.BlockSpec((tn, tk), lambda i, j, k: (j, k)),   # W tile (out, in)
                pl.BlockSpec((1, tn), lambda i, j, k: (0, j)),    # bias tile
            ],
            out_specs=pl.BlockSpec((tm, tn), lambda i, j, k: (i, j)),
            scratch_shapes=[pltpu.VMEM((tm, tn), jnp.float32)],
        ),
        compiler_params=pltpu.CompilerParams(
            dimension_semantics=("parallel", "parallel", "arbitrary")),
        cost_estimate=pl.CostEstimate(
            flops=flops, transcendentals=0, bytes_accessed=bytes_accessed),
    )(x2, weight, b2)

    out = out[:M, :N]
    return out.reshape(*lead, N)


if __name__ == "__main__":
    # Small but lane-aligned shapes consistent with nn.Linear(in_features, out_features).
    batch = 8
    in_features = 256
    out_features = 128

    key = jax.random.PRNGKey(0)
    kx, kw, kb = jax.random.split(key, 3)

    # Deterministic init mimicking nn.Linear's uniform(-1/sqrt(in), 1/sqrt(in))
    bound = 1.0 / jnp.sqrt(jnp.float32(in_features))
    weight = jax.random.uniform(kw, (out_features, in_features), jnp.float32,
                                minval=-bound, maxval=bound)
    bias = jax.random.uniform(kb, (out_features,), jnp.float32,
                              minval=-bound, maxval=bound)
    x = jax.random.normal(kx, (batch, in_features), jnp.float32)

    out = jax.block_until_ready(fhe_linear(x, weight, bias))

    # Reference using the same bf16-rounded operands with full-f32 contraction,
    # so the only difference vs the kernel is f32 accumulation order.
    xb = x.astype(jnp.bfloat16).astype(jnp.float32)
    wb = weight.astype(jnp.bfloat16).astype(jnp.float32)
    ref = lax.dot_general(xb, wb, (((1,), (1,)), ((), ())),
                          precision=lax.Precision.HIGHEST) + bias

    assert out.shape == (batch, out_features)
    assert out.dtype == x.dtype
    assert jnp.allclose(out, ref, atol=2e-4, rtol=2e-4), "mismatch vs reference"

    print("KERNEL_OK")
</pallas_src>

<mosaic_0001>
module attributes {stable_mosaic.version = 11 : i64} {
  func.func @_fhe_linear_kernel(%arg0: i32, %arg1: i32, %arg2: i32, %arg3: memref<8x256xbf16, #tpu.memory_space<vmem>>, %arg4: memref<128x256xbf16, #tpu.memory_space<vmem>>, %arg5: memref<1x128xf32, #tpu.memory_space<vmem>>, %arg6: memref<8x128xf32, #tpu.memory_space<vmem>>, %arg7: memref<8x128xf32, #tpu.memory_space<vmem>>) attributes {dimension_semantics = [#tpu.dimension_semantics<parallel>, #tpu.dimension_semantics<parallel>, #tpu.dimension_semantics<arbitrary>], iteration_bounds = array<i64: 1, 1, 1>, scalar_prefetch = 0 : i64, scratch_operands = 1 : i64, tpu.core_type = #tpu.core_type<tc>, window_params = [{transform_indices = @transform_0, window_bounds = array<i64: 8, 256>}, {transform_indices = @transform_1, window_bounds = array<i64: 128, 256>}, {transform_indices = @transform_2, window_bounds = array<i64: 1, 128>}, {transform_indices = @transform_3, window_bounds = array<i64: 8, 128>}]} {
    %c0_i32 = arith.constant 0 : i32
    %0 = arith.cmpi eq, %arg2, %c0_i32 : i32
    %1 = arith.extui %0 : i1 to i32
    %c0_i32_0 = arith.constant 0 : i32
    %2 = arith.cmpi ne, %1, %c0_i32_0 : i32
    scf.if %2 {
      %cst_10 = arith.constant 0.000000e+00 : f32
      %12 = vector.broadcast %cst_10 : f32 to vector<8x128xf32>
      %c0_11 = arith.constant 0 : index
      %c0_12 = arith.constant 0 : index
      %13 = vector.load %arg7[%c0_11, %c0_12] : memref<8x128xf32, #tpu.memory_space<vmem>>, vector<8x128xf32>
      tpu.vector_store %arg7[%c0_11, %c0_12], %12 {strides = array<i32>} : memref<8x128xf32, #tpu.memory_space<vmem>>, vector<8x128xf32>,
    } else {
    }
    %c0 = arith.constant 0 : index
    %c0_1 = arith.constant 0 : index
    %3 = vector.load %arg7[%c0, %c0_1] : memref<8x128xf32, #tpu.memory_space<vmem>>, vector<8x128xf32>
    %c0_2 = arith.constant 0 : index
    %c0_3 = arith.constant 0 : index
    %4 = vector.load %arg3[%c0_2, %c0_3] : memref<8x256xbf16, #tpu.memory_space<vmem>>, vector<8x256xbf16>
    %c0_4 = arith.constant 0 : index
    %c0_5 = arith.constant 0 : index
    %5 = vector.load %arg4[%c0_4, %c0_5] : memref<128x256xbf16, #tpu.memory_space<vmem>>, vector<128x256xbf16>
    %cst = arith.constant dense<0.000000e+00> : vector<8x128xf32>
    %6 = tpu.matmul %4, %5, %cst {dimension_numbers = #tpu.dot_dimension_numbers<[1], [1], [0], [0], [0, 0, 1, 0], [], []>} : vector<8x256xbf16>, vector<128x256xbf16>, vector<8x128xf32> -> vector<8x128xf32>
    %7 = arith.addf %3, %6 : vector<8x128xf32>
    %c0_6 = arith.constant 0 : index
    %c0_7 = arith.constant 0 : index
    %8 = vector.load %arg7[%c0_6, %c0_7] : memref<8x128xf32, #tpu.memory_space<vmem>>, vector<8x128xf32>
    tpu.vector_store %arg7[%c0_6, %c0_7], %7 {strides = array<i32>} : memref<8x128xf32, #tpu.memory_space<vmem>>, vector<8x128xf32>,
    %c0_i32_8 = arith.constant 0 : i32
    %9 = arith.cmpi eq, %arg2, %c0_i32_8 : i32
    %10 = arith.extui %9 : i1 to i32
    %c0_i32_9 = arith.constant 0 : i32
    %11 = arith.cmpi ne, %10, %c0_i32_9 : i32
    scf.if %11 {
      %c0_10 = arith.constant 0 : index
      %c0_11 = arith.constant 0 : index
      %12 = vector.load %arg7[%c0_10, %c0_11] : memref<8x128xf32, #tpu.memory_space<vmem>>, vector<8x128xf32>
      %c0_12 = arith.constant 0 : index
      %c0_13 = arith.constant 0 : index
      %13 = vector.load %arg5[%c0_12, %c0_13] : memref<1x128xf32, #tpu.memory_space<vmem>>, vector<1x128xf32>
      %14 = vector.broadcast %13 : vector<1x128xf32> to vector<8x128xf32>
      %15 = arith.addf %12, %14 : vector<8x128xf32>
      %c0_14 = arith.constant 0 : index
      %c0_15 = arith.constant 0 : index
      %16 = vector.load %arg6[%c0_14, %c0_15] : memref<8x128xf32, #tpu.memory_space<vmem>>, vector<8x128xf32>
      tpu.vector_store %arg6[%c0_14, %c0_15], %15 {strides = array<i32>} : memref<8x128xf32, #tpu.memory_space<vmem>>, vector<8x128xf32>,
    } else {
    }
    return
  }
  func.func @transform_0(%arg0: i32, %arg1: i32, %arg2: i32) -> (i32, i32) {
    %c0_i32 = arith.constant 0 : i32
    return %arg0, %arg2 : i32, i32
  }
  func.func @transform_1(%arg0: i32, %arg1: i32, %arg2: i32) -> (i32, i32) {
    %c0_i32 = arith.constant 0 : i32
    return %arg1, %arg2 : i32, i32
  }
  func.func @transform_2(%arg0: i32, %arg1: i32, %arg2: i32) -> (i32, i32) {
    %c0_i32 = arith.constant 0 : i32
    %c0_i32_0 = arith.constant 0 : i32
    return %c0_i32, %arg1 : i32, i32
  }
  func.func @transform_3(%arg0: i32, %arg1: i32, %arg2: i32) -> (i32, i32) {
    %c0_i32 = arith.constant 0 : i32
    return %arg0, %arg1 : i32, i32
  }
}

</mosaic_0001>

<bundles_post_ra>
// kernel: tpu_custom_call.1
= control target key start
LH: loop header
LB: loop body
LE: loop exit
PB: predicated region body
PF: predicated region fallthrough
CT: control target
= control target key end

     0   :  { %8 = vsyncpa [#allocation4], 0  ;;  %s412_s0 = inlined_call_operand.hbm [shape: bf16[8,256], index: 0, kind: input, shape index: {}]   ;;  %s413_s1 = inlined_call_operand.hbm [shape: bf16[128,256], index: 1, kind: input, shape index: {}]   ;;  %s414_s2 = inlined_call_operand.vmem [shape: f32[1,128], index: 2, kind: input, shape index: {}]   ;;  %s415_s3 = inlined_call_operand.hbm [shape: f32[8,128], index: 3, kind: output, shape index: {}]  }
   0x1   :  { %9 = vsyncpa [#allocation7], 0 }
   0x2   :  { %10 = vsyncpa [#allocation5], 0  ;;  %s16_s14 = sshll.u32 %s412_s0, 4  ;;  %s375_s15 = smov [#allocation3]   ;;  %s17_s14 = int_to_ptr.hbm [resolvable:$true] %s16_s14 }
   0x3   :  { %s18_s16 = sshll.u32 %s375_s15, 4  ;;  %s26_s19 = sshll.u32 %s413_s1, 4  ;;  %s19_s16 = int_to_ptr.vmem [resolvable:$true] %s18_s16  ;;  %s27_s19 = int_to_ptr.hbm [resolvable:$true] %s26_s19 }
   0x4   :  { %21 = dma.hbm_to_vmem [thread:$0]  %s17_s14, 128, %s19_s16, [#allocation4]  }
   0x5   :  { %s376_s20 = smov [#allocation6]   ;;  %s377_s22 = smov 128  }
   0x6   :  { %s28_s21 = sshll.u32 %s376_s20, 4  ;;  %s378_s23 = smov 8   ;;  %s29_s21 = int_to_ptr.vmem [resolvable:$true] %s28_s21 }
   0x7   :  { %34 = dma.hbm_to_vmem [thread:$0]  %s27_s19, 2048, %s29_s21, [#allocation7], %s377_s22, %s377_s22, %s378_s23  }
   0x8   :  { %369 = dma.done.wait [#allocation4], 128  }
   0x9   :  { %370 = vsyncadd [#allocation4], 4294967168 }
   0xa   :  { %371 = dma.done.wait [#allocation7], 2048  }
   0xb   :  { %372 = vsyncadd [#allocation7], 4294965248  ;;  %v269_v0 = vld [vmem:[#allocation6 + $0x70] sm:$0xf]  ;;  %v290_v1 = vld [vmem:[#allocation6 + $0x74] sm:$0xf0] }
   0xc   :  { %v289_v2 = vld [vmem:[#allocation6 + $0x74] sm:$0xf]  ;;  %v270_v3 = vor.u32 %v290_v1, %v269_v0  ;;  %v271_v4 = vld [vmem:[#allocation6 + $0x78] sm:$0xf0]  ;;  %v261_v6 = vld [vmem:[#allocation6 + $0x60] sm:$0xf] }
   0xd   :  { %v274_v5 = vor.u32 %v289_v2, %v271_v4  ;;  %v288_v7 = vld [vmem:[#allocation6 + $0x64] sm:$0xf0]  ;;  %v287_v8 = vld [vmem:[#allocation6 + $0x64] sm:$0xf]  ;;  %v263_v9 = vld [vmem:[#allocation6 + $0x68] sm:$0xf0] }
   0xe   :  { %155 = vmatpush.bf16.xpose.msra.mxu0 %v270_v3  ;;  %v262_v10 = vor.u32 %v288_v7, %v261_v6  ;;  %v266_v11 = vor.u32 %v287_v8, %v263_v9  ;;  %v253_v12 = vld [vmem:[#allocation6 + $0x50] sm:$0xf]  ;;  %v286_v13 = vld [vmem:[#allocation6 + $0x54] sm:$0xf0]  ;;  %v285_v14 = vld [vmem:[#allocation6 + $0x54] sm:$0xf] }
   0xf   :  { %168 = vmatpush.bf16.xpose.msra.mxu1 %v274_v5  ;;  %v255_v15 = vld [vmem:[#allocation6 + $0x58] sm:$0xf0]  ;;  %v254_v16 = vor.u32 %v286_v13, %v253_v12  ;;  %v245_v18 = vld [vmem:[#allocation6 + $0x40] sm:$0xf]  ;;  %v284_v19 = vld [vmem:[#allocation6 + $0x44] sm:$0xf0] }
  0x10   :  { %v258_v17 = vor.u32 %v285_v14, %v255_v15  ;;  %v283_v20 = vld [vmem:[#allocation6 + $0x44] sm:$0xf]  ;;  %v247_v21 = vld [vmem:[#allocation6 + $0x48] sm:$0xf0]  ;;  %v246_v22 = vor.u32 %v284_v19, %v245_v18  ;;  %v237_v24 = vld [vmem:[#allocation6 + $0x30] sm:$0xf] }
  0x11   :  { %v250_v23 = vor.u32 %v283_v20, %v247_v21  ;;  %v282_v25 = vld [vmem:[#allocation6 + $0x34] sm:$0xf0]  ;;  %v281_v26 = vld [vmem:[#allocation6 + $0x34] sm:$0xf]  ;;  %v239_v27 = vld [vmem:[#allocation6 + $0x38] sm:$0xf0] }
  0x12   :  { %v238_v28 = vor.u32 %v282_v25, %v237_v24  ;;  %v242_v29 = vor.u32 %v281_v26, %v239_v27  ;;  %v229_v30 = vld [vmem:[#allocation6 + $0x20] sm:$0xf]  ;;  %v280_v31 = vld [vmem:[#allocation6 + $0x24] sm:$0xf0]  ;;  %v279_v32 = vld [vmem:[#allocation6 + $0x24] sm:$0xf] }
  0x13   :  { %v231_v33 = vld [vmem:[#allocation6 + $0x28] sm:$0xf0]  ;;  %v230_v34 = vor.u32 %v280_v31, %v229_v30  ;;  %v221_v36 = vld [vmem:[#allocation6 + $0x10] sm:$0xf]  ;;  %v278_v37 = vld [vmem:[#allocation6 + $0x14] sm:$0xf0] }
  0x14   :  { %v234_v35 = vor.u32 %v279_v32, %v231_v33  ;;  %v277_v38 = vld [vmem:[#allocation6 + $0x14] sm:$0xf]  ;;  %v223_v39 = vld [vmem:[#allocation6 + $0x18] sm:$0xf0]  ;;  %v222_v40 = vor.u32 %v278_v37, %v221_v36  ;;  %v213_v42 = vld [vmem:[#allocation6] sm:$0xf] }
  0x15   :  { %v226_v41 = vor.u32 %v277_v38, %v223_v39  ;;  %v276_v43 = vld [vmem:[#allocation6 + $0x4] sm:$0xf0]  ;;  %v275_v44 = vld [vmem:[#allocation6 + $0x4] sm:$0xf]  ;;  %v215_v45 = vld [vmem:[#allocation6 + $0x8] sm:$0xf0] }
  0x16   :  { %156 = vmatpush.bf16.xpose.msra.mxu0 %v262_v10  ;;  %v214_v46 = vor.u32 %v276_v43, %v213_v42  ;;  %v51_v47 = vld [vmem:[#allocation3] sm:$0xff]  ;;  %v218_v48 = vor.u32 %v275_v44, %v215_v45  ;;  %s379_s24 = smov [#allocation8]   ;;  %s200_s28 = sshll.u32 %s415_s3, 4  ;;  %s201_s28 = int_to_ptr.hbm [resolvable:$true] %s200_s28 }
  0x17   :  { %169 = vmatpush.bf16.xpose.msra.mxu1 %v266_v11  ;;  %v69_v49 = vunpack.c.l.b16 %v51_v47  ;;  %v70_v50 = vunpack.c.h.b16 %v51_v47  ;;  %v296_v54 = vld [vmem:[%s414_s2] ss:$0 sm:$0xff]  ;;  %s198_s25 = sshll.u32 %s379_s24, 4  ;;  %s199_s25 = int_to_ptr.vmem [resolvable:$true] %s198_s25 }
  0x19   :  { %v71_v51 = vpack.c.b16 %v69_v49, %v69_v49  ;;  %v72_v52 = vpack.c.b16 %v70_v50, %v70_v50 }
  0x1e   :  { %157 = vmatpush.bf16.xpose.msra.mxu0 %v254_v16 }
  0x1f   :  { %170 = vmatpush.bf16.xpose.msra.mxu1 %v258_v17 }
  0x26   :  { %158 = vmatpush.bf16.xpose.msra.mxu0 %v246_v22 }
  0x27   :  { %171 = vmatpush.bf16.xpose.msra.mxu1 %v250_v23 }
  0x2e   :  { %159 = vmatpush.bf16.xpose.msra.mxu0 %v238_v28 }
  0x2f   :  { %172 = vmatpush.bf16.xpose.msra.mxu1 %v242_v29 }
  0x36   :  { %160 = vmatpush.bf16.xpose.msra.mxu0 %v230_v34 }
  0x37   :  { %173 = vmatpush.bf16.xpose.msra.mxu1 %v234_v35 }
  0x3e   :  { %161 = vmatpush.bf16.xpose.msra.mxu0 %v222_v40 }
  0x3f   :  { %174 = vmatpush.bf16.xpose.msra.mxu1 %v226_v41 }
  0x46   :  { %162 = vmatpush.bf16.xpose.msra.mxu0 %v214_v46 }
  0x47   :  { %175 = vmatpush.bf16.xpose.msra.mxu1 %v218_v48 }
  0x4d   :  { %163 = vmatmul.bf16.vlgmr.msra.gmra.mxu0 %v71_v51 }
  0x4e   :  { %176 = vmatmul.bf16.vlgmr.msra.gmra.mxu1 %v72_v52 }
  0xca   :  { %v164_v53 = vpop.f32.mrf.mxu0 }
  0xcb   :  { %v177_v55 = vpop.f32.mrf.mxu1 }
  0xcc   :  { %v178_v56 = vadd.f32 %v177_v55, %v164_v53 }
  0xce   :  { %v191_v57 = vadd.f32 %v296_v54, %v178_v56 }
  0xd0   :  { %192 = vst [vmem:[#allocation8] sm:$0xff] %v191_v57 }
  0xd1   :  { %203 = dma.vmem_to_hbm [thread:$0]  %s199_s25, 128, %s201_s28, [#allocation5]  }
  0xd2   :  { %v166_v58 = vpop.f32.mrf.mxu0 }
  0xd3   :  { %v179_v59 = vpop.f32.mrf.mxu1 }
  0xd4   :  { %373 = dma.done.wait [#allocation5], 128  }
  0xd5   :  { %374 = vsyncadd [#allocation5], 4294967168 }
  0xd6   :  { %208 = vsyncpa [#allocation4], 1 }
  0xd7   :  { %209 = vsyncpa [#allocation7], 1 }
  0xd8   :  { %210 = vsyncpa [#allocation5], 1 }

</bundles_post_ra>
